<compile_context>
chip_gen: v5e
topology: v5e:2x2
jax: 0.10.0
libtpu: 0.0.40
codegen_flags: <defaults>
</compile_context>

<pallas_src>
import jax
import jax.numpy as jnp
from jax.experimental import pallas as pl
from jax.experimental.pallas import tpu as pltpu


def _cdiv(a, b):
    return -(-a // b)


def _softpool_kernel(x_ref, aw_ref, ah_ref, inv_den_ref, o_ref):
    # x_ref:       (TB, H, W)   batch of (n, c) images for this grid step
    # aw_ref:      (W, Wo)      0/1 window selection (clipped), pools W -> Wo
    # ah_ref:      (Ho, H)      0/1 window selection (clipped), pools H -> Ho
    # inv_den_ref: (Ho, Wo)     1 / valid-pixel-count  (grid invariant)
    # o_ref:       (TB, Ho, Wo)
    tb, h, w = x_ref.shape
    ho, _ = inv_den_ref.shape

    e = jnp.exp(x_ref[...].astype(jnp.float32))                   # EUP, (TB,H,W)

    # Pool along W (lane axis) on the MXU: (TB*H, W) @ (W, Wo).
    t = jnp.dot(e.reshape(tb * h, w), aw_ref[...],
                preferred_element_type=jnp.float32).reshape(tb, h, -1)

    # Pool along H (sublane axis): batched contraction, no transposes needed.
    ah_b = jnp.broadcast_to(ah_ref[...], (tb, ho, h))
    num = jnp.einsum('bgh,bho->bgo', ah_b, t,
                     preferred_element_type=jnp.float32)           # (TB,Ho,Wo)

    o_ref[...] = (num * inv_den_ref[...]).astype(o_ref.dtype)


def softpool2d(x, kernel_size, stride=None, padding=0):
    """Pallas implementation of SoftPool2d.forward.  x: (N, C, H, W)."""
    k = int(kernel_size)
    s = k if stride is None else int(stride)
    p = int(padding)
    if not (0 <= p < k):
        # p >= k would create output windows with zero valid pixels (0/0).
        raise ValueError("padding must satisfy 0 <= padding < kernel_size")

    N, C, H, W = x.shape
    Ho = (H + 2 * p - k) // s + 1
    Wo = (W + 2 * p - k) // s + 1
    BC = N * C

    # 0/1 window-selection matrices against UNPADDED indices, with each output
    # window [o*s - p, o*s - p + k) clipped to the valid input range.
    def sel(in_size, out_size):
        o = jnp.arange(out_size)[:, None]
        i = jnp.arange(in_size)[None, :]
        lo = o * s - p
        return ((i >= lo) & (i < lo + k)).astype(jnp.float32)      # (out, in)

    ah = sel(H, Ho)                                                # (Ho, H)
    aw = sel(W, Wo).T                                              # (W, Wo)

    # Grid-invariant denominator (valid pixels per window), hoisted out of the
    # kernel as a tiny constant.
    cnt = ah.sum(axis=1)[:, None] * aw.sum(axis=0)[None, :]        # (Ho, Wo)
    inv_den = 1.0 / cnt

    xr = x.reshape(BC, H, W)

    # ---- choose images-per-step TB (amortize grid overhead, bound VMEM) ----
    per_img_f32 = H * W * 4
    tb_cap = max(1, (1 * 1024 * 1024) // per_img_f32)   # ~1 MiB of f32 / block
    TB = max(1, min(BC, 256, tb_cap))
    n_steps = _cdiv(BC, TB)
    if BC > 1:
        n_steps = max(2, n_steps)          # keep >= 2 parallel steps (v7x 2 TCs)
    TB = _cdiv(BC, n_steps)                # rebalance so padding is minimal
    BCp = TB * n_steps
    if BCp != BC:
        xr = jnp.pad(xr, ((0, BCp - BC), (0, 0), (0, 0)))

    out = pl.pallas_call(
        _softpool_kernel,
        out_shape=jax.ShapeDtypeStruct((BCp, Ho, Wo), x.dtype),
        grid_spec=pltpu.PrefetchScalarGridSpec(
            num_scalar_prefetch=0,
            grid=(n_steps,),
            in_specs=[
                pl.BlockSpec((TB, H, W), lambda i: (i, 0, 0)),
                pl.BlockSpec((W, Wo), lambda i: (0, 0)),
                pl.BlockSpec((Ho, H), lambda i: (0, 0)),
                pl.BlockSpec((Ho, Wo), lambda i: (0, 0)),
            ],
            out_specs=pl.BlockSpec((TB, Ho, Wo), lambda i: (i, 0, 0)),
        ),
        compiler_params=pltpu.CompilerParams(
            dimension_semantics=("parallel",),
            vmem_limit_bytes=32 * 1024 * 1024,
        ),
    )(xr, aw, ah, inv_den)

    if BCp != BC:
        out = out[:BC]
    return out.reshape(N, C, Ho, Wo)


def softpool2d_ref(x, kernel_size, stride=None, padding=0):
    """Pure-JAX reference mirroring the PyTorch module (reduce_window)."""
    k = int(kernel_size)
    s = k if stride is None else int(stride)
    p = int(padding)

    def avg_pool(v):
        summed = jax.lax.reduce_window(
            v, 0.0, jax.lax.add,
            window_dimensions=(1, 1, k, k),
            window_strides=(1, 1, s, s),
            padding=[(0, 0), (0, 0), (p, p), (p, p)])
        return summed / float(k * k)

    x_exp = jnp.exp(x)
    sum_pool = avg_pool(x_exp)
    denom = avg_pool(jnp.ones_like(x))
    return sum_pool / denom


if __name__ == "__main__":
    key = jax.random.PRNGKey(0)
    x = jax.random.normal(key, (2, 4, 16, 16), dtype=jnp.float32)

    # Case 1: kernel_size=2 (stride defaults to kernel_size), padding=0
    y1 = jax.block_until_ready(softpool2d(x, kernel_size=2))
    r1 = softpool2d_ref(x, kernel_size=2)
    assert y1.shape == (2, 4, 8, 8), y1.shape
    assert jnp.allclose(y1, r1, rtol=1e-5, atol=1e-5)

    # Case 2: overlapping windows + padding (exercises clipped windows / inv_den)
    y2 = jax.block_until_ready(softpool2d(x, kernel_size=3, stride=2, padding=1))
    r2 = softpool2d_ref(x, kernel_size=3, stride=2, padding=1)
    assert y2.shape == r2.shape, (y2.shape, r2.shape)
    assert jnp.allclose(y2, r2, rtol=1e-5, atol=1e-5)

    print("KERNEL_OK")
</pallas_src>

<mosaic_0001>
module attributes {stable_mosaic.version = 11 : i64} {
  func.func @_softpool_kernel(%arg0: i32, %arg1: memref<4x16x16xf32, #tpu.memory_space<vmem>>, %arg2: memref<16x8xf32, #tpu.memory_space<vmem>>, %arg3: memref<8x16xf32, #tpu.memory_space<vmem>>, %arg4: memref<8x8xf32, #tpu.memory_space<vmem>>, %arg5: memref<4x8x8xf32, #tpu.memory_space<vmem>>) attributes {dimension_semantics = [#tpu.dimension_semantics<parallel>], iteration_bounds = array<i64: 2>, scalar_prefetch = 0 : i64, scratch_operands = 0 : i64, tpu.core_type = #tpu.core_type<tc>, window_params = [{transform_indices = @transform_0, window_bounds = array<i64: 4, 16, 16>}, {pipeline_mode = #tpu.pipeline_mode<synchronous>, transform_indices = @transform_1, window_bounds = array<i64: 16, 8>}, {pipeline_mode = #tpu.pipeline_mode<synchronous>, transform_indices = @transform_2, window_bounds = array<i64: 8, 16>}, {pipeline_mode = #tpu.pipeline_mode<synchronous>, transform_indices = @transform_3, window_bounds = array<i64: 8, 8>}, {transform_indices = @transform_4, window_bounds = array<i64: 4, 8, 8>}]} {
    %c0 = arith.constant 0 : index
    %c0_0 = arith.constant 0 : index
    %c0_1 = arith.constant 0 : index
    %0 = vector.load %arg1[%c0, %c0_0, %c0_1] : memref<4x16x16xf32, #tpu.memory_space<vmem>>, vector<4x16x16xf32>
    %1 = math.exp %0 : vector<4x16x16xf32>
    %2 = vector.shape_cast %1 : vector<4x16x16xf32> to vector<64x16xf32>
    %c0_2 = arith.constant 0 : index
    %c0_3 = arith.constant 0 : index
    %3 = vector.load %arg2[%c0_2, %c0_3] : memref<16x8xf32, #tpu.memory_space<vmem>>, vector<16x8xf32>
    %cst = arith.constant dense<0.000000e+00> : vector<64x8xf32>
    %4 = tpu.matmul %2, %3, %cst {dimension_numbers = #tpu.dot_dimension_numbers<[1], [0], [0], [1], [0, 0, 1, 1], [], []>} : vector<64x16xf32>, vector<16x8xf32>, vector<64x8xf32> -> vector<64x8xf32>
    %5 = vector.shape_cast %4 : vector<64x8xf32> to vector<4x16x8xf32>
    %c0_4 = arith.constant 0 : index
    %c0_5 = arith.constant 0 : index
    %6 = vector.load %arg3[%c0_4, %c0_5] : memref<8x16xf32, #tpu.memory_space<vmem>>, vector<8x16xf32>
    %7 = vector.shape_cast %6 : vector<8x16xf32> to vector<1x8x16xf32>
    %8 = vector.broadcast %7 : vector<1x8x16xf32> to vector<4x8x16xf32>
    "tpu.trace_start"() <{level = 10 : i32, message = "bgh,bho->bgo"}> : () -> ()
    %cst_6 = arith.constant dense<0.000000e+00> : vector<4x8x8xf32>
    %9 = tpu.matmul %8, %5, %cst_6 {dimension_numbers = #tpu.dot_dimension_numbers<[2], [1], [1], [2], [0, 0, 0, 1, 1, 2], [0], [0]>} : vector<4x8x16xf32>, vector<4x16x8xf32>, vector<4x8x8xf32> -> vector<4x8x8xf32>
    "tpu.trace_stop"() : () -> ()
    %c0_7 = arith.constant 0 : index
    %c0_8 = arith.constant 0 : index
    %10 = vector.load %arg4[%c0_7, %c0_8] : memref<8x8xf32, #tpu.memory_space<vmem>>, vector<8x8xf32>
    %11 = vector.shape_cast %10 : vector<8x8xf32> to vector<1x8x8xf32>
    %12 = vector.broadcast %11 : vector<1x8x8xf32> to vector<4x8x8xf32>
    %13 = arith.mulf %9, %12 : vector<4x8x8xf32>
    %c0_9 = arith.constant 0 : index
    %c0_10 = arith.constant 0 : index
    %c0_11 = arith.constant 0 : index
    %14 = vector.load %arg5[%c0_9, %c0_10, %c0_11] : memref<4x8x8xf32, #tpu.memory_space<vmem>>, vector<4x8x8xf32>
    tpu.vector_store %arg5[%c0_9, %c0_10, %c0_11], %13 {strides = array<i32>} : memref<4x8x8xf32, #tpu.memory_space<vmem>>, vector<4x8x8xf32>,
    return
  }
  func.func @transform_0(%arg0: i32) -> (i32, i32, i32) {
    %c0_i32 = arith.constant 0 : i32
    %c0_i32_0 = arith.constant 0 : i32
    %c0_i32_1 = arith.constant 0 : i32
    return %arg0, %c0_i32, %c0_i32_0 : i32, i32, i32
  }
  func.func @transform_1(%arg0: i32) -> (i32, i32) {
    %c0_i32 = arith.constant 0 : i32
    %c0_i32_0 = arith.constant 0 : i32
    %c0_i32_1 = arith.constant 0 : i32
    return %c0_i32, %c0_i32_0 : i32, i32
  }
  func.func @transform_2(%arg0: i32) -> (i32, i32) {
    %c0_i32 = arith.constant 0 : i32
    %c0_i32_0 = arith.constant 0 : i32
    %c0_i32_1 = arith.constant 0 : i32
    return %c0_i32, %c0_i32_0 : i32, i32
  }
  func.func @transform_3(%arg0: i32) -> (i32, i32) {
    %c0_i32 = arith.constant 0 : i32
    %c0_i32_0 = arith.constant 0 : i32
    %c0_i32_1 = arith.constant 0 : i32
    return %c0_i32, %c0_i32_0 : i32, i32
  }
  func.func @transform_4(%arg0: i32) -> (i32, i32, i32) {
    %c0_i32 = arith.constant 0 : i32
    %c0_i32_0 = arith.constant 0 : i32
    %c0_i32_1 = arith.constant 0 : i32
    return %arg0, %c0_i32, %c0_i32_0 : i32, i32, i32
  }
}

</mosaic_0001>

<bundles_post_ra>
// kernel: tpu_custom_call.1
= control target key start
LH: loop header
LB: loop body
LE: loop exit
PB: predicated region body
PF: predicated region fallthrough
CT: control target
= control target key end

     0   :  { %9 = vsyncpa [#allocation3], 0  ;;  %s891_s0 = inlined_call_operand.hbm [shape: f32[8,16,16], index: 0, kind: input, shape index: {}]   ;;  %s892_s1 = inlined_call_operand.vmem [shape: f32[16,8], index: 1, kind: input, shape index: {}]   ;;  %s893_s2 = inlined_call_operand.vmem [shape: f32[8,16], index: 2, kind: input, shape index: {}]   ;;  %s894_s3 = inlined_call_operand.vmem [shape: f32[8,8], index: 3, kind: input, shape index: {}]   ;;  %s895_s4 = inlined_call_operand.hbm [shape: f32[8,8,8], index: 4, kind: output, shape index: {}]  }
   0x1   :  { %11 = vsyncpa [#allocation3 + $0x1], 0 }
   0x2   :  { %12 = vsyncpa [#allocation4], 0 }
   0x3   :  { %14 = vsyncpa [#allocation4 + $0x1], 0  ;;  %s725_s15 = smov 0   ;;  %s727_s16 = smov 0  }
   0x4   :  { %s729_s17 = smov 0   ;;  %s731_s18 = smov 0  }
   0x5 LB: > { %s746_s19 = sadd.s32 4294967295, %s694_s18   ;;  %s496_s20 = sadd.s32 4294967294, %s694_s18   ;;  %s694_s18 = sphi %s731_s18, %s905_s18   ;;  %s690_s17 = sphi %s729_s17, %s904_s17   ;;  %s686_s16 = sphi %s727_s16, %s903_s16   ;;  %s682_s15 = sphi %s725_s15, %s902_s15  }
   0x6   : > { %s750_s21 = sadd.s32 1, %s694_s18   ;;  %s27_s22 = sadd.s32 1, %s690_s17 }
   0x7   : > { %s24_s23 = ssub.s32 %s694_s18, %s750_s21  ;;  %p34_p0 = scmp.ne.s32.totalorder %s690_s17, %s686_s16 }
   0x8   : > { %p25_p1 = scmp.eq.s32.totalorder %s24_s23, 0  ;;  %p35_p2 = scmp.eq.s32.totalorder %s694_s18, 0 }
   0x9   : > { %p40_p3 = scmp.ne.s32.totalorder %s686_s16, %s682_s15  ;;  %p41_p4 = scmp.eq.s32.totalorder %s746_s19, 0 }
   0xa   : > { %s762_s24 = scalar_select %p25_p1, %s690_s17, %s27_s22  }
   0xb   : > { %p764_p5 = por %p35_p2, %p34_p0  ;;  %p768_p6 = por %p41_p4, %p40_p3 }
   0xc   : > { %p127_p7 = scmp.eq.s32.totalorder %s746_s19, 1  ;;  %p133_p8 = scmp.eq.s32.totalorder %s496_s20, 1 }
   0xd   : > { %p544_p10 = scmp.lt.s32.totalorder %s694_s18, 2  ;;  %s162_s29 = sand.u32 1, %s690_s17  }
   0xe   : > { %p775_p11 = por %p127_p7, %p34_p0  ;;  %p779_p12 = por %p133_p8, %p40_p3 }
   0xf   : > { %s524_s30 = sshll.u32 %s694_s18, 6  ;;  %s499_s5 = sshll.u32 %s162_s29, 6 }
  0x10   : > { %s172_s8 = scalar_lea.hbm %s891_s0, %s524_s30  ;;  %s166_s10 = scalar_lea.vmem [#allocation2], %s499_s5 }
  0x11   : > { %s173_s9 = sshll.u32 %s172_s8, 4  ;;  %s175_s11 = sshll.u32 %s166_s10, 4  ;;  %s174_s9 = int_to_ptr.hbm [resolvable:$true] %s173_s9  ;;  %s176_s11 = int_to_ptr.vmem [resolvable:$true] %s175_s11 }
  0x12   : > { %p790_p13 = pnand %p544_p10, %p764_p5  ;;  %p503_p0 = scmp.ge.s32.totalorder %s694_s18, 1 }
  0x13   : > { %p183_p1 = scmp.lt.s32.totalorder %s694_s18, 3  ;;  %s163_s13 = scalar_lea.sflag [#allocation3], %s162_s29 }
  0x14   : > { %s598_s14 = sshra.s32 %s174_s9, 4  ;;  %p602_p3 = pneg %p790_p13  ;;  %s599_s14 = int_to_ptr.hbm [resolvable:$true] %s598_s14 }
  0x15   : > { %s600_s20 = scalar_lea.hbm %s599_s14, 64  ;;  %s605_s25 = scalar_lea.hbm %s891_s0, 128 }
  0x16   : > { %p601_p2 = scmp.ne.s32.totalorder %s599_s14, %s600_s20  ;;  %p606_p5 = scmp.lt.s32.totalorder %s599_s14, %s891_s0 }
  0x17   : > { %p607_p8 = scmp.lt.s32.totalorder %s605_s25, %s600_s20 }
  0x18   : > { %p603_p4 = pnand %p602_p3, %p601_p2 }
  0x19   : > { %p608_p10 = por %p607_p8, %p606_p5 }
  0x1a   : > { %p604_p7 = pneg %p603_p4 }
  0x1c   : > { %p609_p9 = pnand %p608_p10, %p604_p7 }
  0x1e   : > { %612 = shalt.err (!%p609_p9)
}
  0x1f   : > { %s696_s29 = smov 128   ;;  %s697_s6 = smov 8  }
  0x20   : > { %539 = dma.hbm_to_vmem [thread:$0]  (!%p790_p13), %s174_s9, 1024, %s176_s11, %s163_s13, %s696_s29, %s696_s29, %s697_s6  }
  0x21   : > { %p184_p2 = pnand %p503_p0, %p183_p1 }
  0x22   : > { %s811_s7 = sand.u32 (!%p184_p2), 1, %s686_s16  }
  0x23   : > { %187 = sbr.rel (%p184_p2) target bundleno = 334 (0x14e), region = 36  ;;  %s504_s8 = sshll.u32 (!%p184_p2), %s811_s7, 6 }
  0x24   : > { %s190_s10 = scalar_lea.sflag (!%p184_p2), [#allocation3], %s811_s7  ;;  %s815_s14 = scalar_lea.vmem (!%p184_p2), [#allocation2], %s504_s8 }
  0x28   : > { %673 = dma.done.wait (%p768_p6), %s190_s10, 1024  }
  0x29   : > { %675 = vsyncadd (%p768_p6), %s190_s10, 4294966272  ;;  %v246_v0 = vld [vmem:[%s892_s1 + $0x8] sm:$0xff]  ;;  %v245_v1 = vld [vmem:[%s892_s1] sm:$0xff]  ;;  %vm247_vm0 = vcmask 130048   ;;  %s505_s22 = sshll.u32 %s811_s7, 5  ;;  %vm402_vm1 = vcmask 64512  }
  0x2a   : > { %v221_v2 = vld [vmem:[%s815_s14] sm:$0xff]  ;;  %286 = vmatpush.msra.mxu0 %v246_v0  ;;  %527 = vmatpush.msra.mxu2 %v246_v0  ;;  %v227_v5 = vld [vmem:[%s815_s14 + $0x30] sm:$0xff]  ;;  %v222_v6 = vld [vmem:[%s815_s14 + $0x8] sm:$0xff]  ;;  %s218_s30 = scalar_lea.vmem [#allocation5], %s505_s22  ;;  %s525_s5 = sshll.u32 %s746_s19, 5 }
  0x2b   : > { %v229_v3 = vmul.f32 1.442695, %v221_v2  ;;  %v225_v4 = vld [vmem:[%s815_s14 + $0x20] sm:$0xff]  ;;  %528 = vmatpush.msra.mxu3 %v246_v0  ;;  %v241_v8 = vmul.f32 1.442695, %v227_v5  ;;  %526 = vmatpush.msra.mxu1 %v246_v0  ;;  %v226_v9 = vld [vmem:[%s815_s14 + $0x28] sm:$0xff]  ;;  %s419_s8 = scalar_lea.hbm %s895_s4, %s525_s5 }
  0x2c   : > { %v237_v7 = vmul.f32 1.442695, %v225_v4  ;;  %287 = vmatpush.msra.mxu0 %v245_v1  ;;  %530 = vmatpush.msra.mxu2 %v245_v1  ;;  %v224_v10 = vld [vmem:[%s815_s14 + $0x18] sm:$0xff]  ;;  %v231_v11 = vmul.f32 1.442695, %v222_v6  ;;  %v223_v18 = vld [vmem:[%s815_s14 + $0x10] sm:$0xff] }
  0x2d   : > { %582 = vpow2.f32 %v229_v3  ;;  %531 = vmatpush.msra.mxu3 %v245_v1  ;;  %v228_v12 = vld [vmem:[%s815_s14 + $0x38] sm:$0xff]  ;;  %529 = vmatpush.msra.mxu1 %v245_v1  ;;  %v235_v13 = vmul.f32 1.442695, %v224_v10  ;;  %v239_v14 = vmul.f32 1.442695, %v226_v9  ;;  %v313_v31 = vld [vmem:[%s893_s2] sm:$0xff] }
  0x2e   : > { %584 = vpow2.f32 %v237_v7  ;;  %v243_v15 = vmul.f32 1.442695, %v228_v12  ;;  %v233_v20 = vmul.f32 1.442695, %v223_v18  ;;  %v397_v35 = vld [vmem:[%s894_s3] sm:$0xff]  ;;  %s420_s10 = sshll.u32 %s218_s30, 4  ;;  %s421_s10 = int_to_ptr.vmem [resolvable:$true] %s420_s10 }
  0x2f   : > { %586 = vpow2.f32 %v241_v8  ;;  %s422_s14 = sshll.u32 %s419_s8, 4  ;;  %s408_s19 = scalar_lea.sflag [#allocation4], %s811_s7  ;;  %s423_s14 = int_to_ptr.hbm [resolvable:$true] %s422_s14 }
  0x30   : > { %588 = vpow2.f32 %v231_v11  ;;  %s642_s9 = sshra.s32 %s423_s14, 4  ;;  %s648_s26 = scalar_lea.hbm %s895_s4, 64  ;;  %s643_s9 = int_to_ptr.hbm [resolvable:$true] %s642_s9 }
  0x31   : > { %590 = vpow2.f32 %v235_v13  ;;  %s644_s11 = scalar_lea.hbm %s643_s9, 32  ;;  %p649_p0 = scmp.lt.s32.totalorder %s643_s9, %s895_s4 }
  0x32   : > { %592 = vpow2.f32 %v239_v14  ;;  %p645_p6 = scmp.ne.s32.totalorder %s643_s9, %s644_s11  ;;  %p650_p1 = scmp.lt.s32.totalorder %s648_s26, %s644_s11 }
  0x33   : > { %v583_v16 = vpop.eup %582  ;;  %594 = vpow2.f32 %v243_v15 }
  0x34   : > { %v585_v17 = vpop.eup %584  ;;  %506 = vmatmul.msk.f32.vlgmr.msra.gmra.mxu0 %vm247_vm0, %v583_v16  ;;  %596 = vpow2.f32 %v233_v20  ;;  %p646_p9 = pnand %p645_p6, %p775_p11  ;;  %p651_p3 = por %p650_p1, %p649_p0 }
  0x35   : > { %v587_v19 = vpop.eup %586  ;;  %510 = vmatmul.msk.f32.vlgmr.msra.gmra.mxu2 %vm247_vm0, %v585_v17 }
  0x36   : > { %512 = vmatmul.msk.f32.vlgmr.msra.gmra.mxu3 %vm247_vm0, %v587_v19  ;;  %v589_v21 = vpop.eup %588  ;;  %p647_p13 = pneg %p646_p9 }
  0x37   : > { %v591_v22 = vpop.eup %590 }
  0x38   : > { %v593_v23 = vpop.eup %592  ;;  %509 = vmatmul.msk.f32.vlgmr.msra.gmra.mxu1 %vm247_vm0, %v591_v22  ;;  %p652_p4 = pnand %p651_p3, %p647_p13 }
  0x39   : > { %v595_v24 = vpop.eup %594 }
  0x3a   : > { %v597_v25 = vpop.eup %596 }
  0x3c   : > { %507 = vmatmul.msk.f32.gmra.mxu0 %vm247_vm0, %v589_v21 }
  0x3d   : > { %511 = vmatmul.msk.f32.gmra.mxu2 %vm247_vm0, %v593_v23 }
  0x3e   : > { %513 = vmatmul.msk.f32.gmra.mxu3 %vm247_vm0, %v595_v24 }
  0x44   : > { %508 = vmatmul.msk.f32.gmra.mxu0 %vm247_vm0, %v597_v25 }
  0xb1   : > { %v289_v26 = vpop.f32.mrf.mxu0 }
  0xb5   : > { %v298_v27 = vpop.f32.mrf.mxu1 }
  0xb6   : > { %351 = vmatpush.msrb.mxu2 %v298_v27 }
  0xb8   : > { %v301_v28 = vpop.f32.mrf.mxu2 }
  0xb9   : > { %v292_v29 = vpop.f32.mrf.mxu0  ;;  %v307_v30 = vpop.f32.mrf.mxu3 }
  0xba   : > { %331 = vmatpush.msrb.mxu1 %v292_v29 }
  0xbc   : > { %332 = vmatpush.msrb.mxu1 %v289_v26 }
  0xbd   : > { %514 = vmatmul.msk.f32.vlgmr.msrb.gmra.mxu1 %vm247_vm0, %v313_v31 }
  0xc0   : > { %v304_v32 = vpop.f32.mrf.mxu2 }
  0xc1   : > { %371 = vmatpush.msrb.mxu3 %v304_v32  ;;  %v310_v33 = vpop.f32.mrf.mxu3  ;;  %v295_v34 = vpop.f32.mrf.mxu0 }
  0xc2   : > { %391 = vmatpush.msra.mxu1 %v310_v33  ;;  %352 = vmatpush.msrb.mxu2 %v295_v34 }
  0xc3   : > { %372 = vmatpush.msrb.mxu3 %v301_v28  ;;  %515 = vmatmul.msk.f32.vlgmr.msrb.gmra.mxu2 %vm247_vm0, %v313_v31 }
  0xc4   : > { %392 = vmatpush.msra.mxu1 %v307_v30  ;;  %516 = vmatmul.msk.f32.vlgmr.msrb.gmra.mxu3 %vm247_vm0, %v313_v31 }
  0xc5   : > { %517 = vmatmul.msk.f32.vlgmr.msra.gmra.mxu1 %vm247_vm0, %v313_v31 }
 0x13a   : > { %v334_v36 = vpop.f32.mrf.mxu1 }
 0x13b   : > { %v398_v37 = vmul.f32 %v397_v35, %v334_v36 }
 0x13d   : > { %403 = vst.msk [vmem:[%s218_s30] sm:$0xff] %vm402_vm1, %v398_v37 }
 0x142   : > { %v394_v38 = vpop.f32.mrf.mxu1 }
 0x143   : > { %v401_v39 = vmul.f32 %v397_v35, %v394_v38 }
 0x145   : > { %406 = vst.msk [vmem:[%s218_s30 + $0x18] sm:$0xff] %vm402_vm1, %v401_v39 }
 0x146   : > { %v354_v40 = vpop.f32.mrf.mxu2 }
 0x147   : > { %v399_v41 = vmul.f32 %v397_v35, %v354_v40  ;;  %v374_v42 = vpop.f32.mrf.mxu3 }
 0x148   : > { %v400_v43 = vmul.f32 %v397_v35, %v374_v42 }
 0x149   : > { %404 = vst.msk [vmem:[%s218_s30 + $0x8] sm:$0xff] %vm402_vm1, %v399_v41 }
 0x14a   : > { %405 = vst.msk [vmem:[%s218_s30 + $0x10] sm:$0xff] %vm402_vm1, %v400_v43 }
 0x14b   : > { %655 = shalt.err (!%p652_p4)
}
 0x14c   : > { %s698_s7 = smov 128   ;;  %s699_s23 = smov 8  }
 0x14d   : > { %534 = dma.vmem_to_hbm [thread:$0]  (%p775_p11), %s421_s10, 512, %s423_s14, %s408_s19, %s698_s7, %s698_s7, %s699_s23  }
 0x14e PF: > { %s437_s25 = sand.u32 1, %s682_s15   ;;  %p901_p7 = scmp.ge.s32.totalorder %s694_s18, 2 }
 0x14f   : > { %s438_s30 = scalar_lea.sflag [#allocation4], %s437_s25 }
 0x150   : > { %p541_p5 = pnand %p901_p7, %p779_p12 }
 0x152   : > { %p542_p8 = pneg %p541_p5 }
 0x154   : > { %677 = dma.done.wait (%p542_p8), %s438_s30, 512  }
 0x155   : > { %679 = vsyncadd (%p542_p8), %s438_s30, 4294966784  ;;  %p17_p10 = scmp.ge.s32.totalorder %s750_s21, 4   ;;  %s902_s15 = smov %s686_s16 }
 0x156   : > { %s903_s16 = smov %s690_s17  ;;  %s904_s17 = smov %s762_s24 }
 0x157   : > { %s905_s18 = smov %s750_s21  ;;  %19 = sbr.rel (!%p17_p10) target bundleno = 5 (0x5), region = 81 }
 0x15c   :  { %444 = vsyncpa [#allocation3], 1 }
 0x15d   :  { %446 = vsyncpa [#allocation3 + $0x1], 1 }
 0x15e   :  { %447 = vsyncpa [#allocation4], 1 }
 0x15f   :  { %449 = vsyncpa [#allocation4 + $0x1], 1 }

</bundles_post_ra>
